<compile_context>
chip_gen: v7x
topology: tpu7x:2x2x1
jax: 0.10.0
libtpu: 0.0.40
codegen_flags: <defaults>
</compile_context>

<pallas_src>
import functools

import jax
import jax.numpy as jnp
from jax.experimental import pallas as pl
from jax.experimental.pallas import tpu as pltpu


# ----------------------------- Pallas kernel ------------------------------

def mapping_kernel(x_ref, w0_ref, b0_ref, wr_ref, br_ref, o_ref, *,
                   scale0, scale_rest, n_rest, eps):
    """PixelNorm -> WsLinear(+ReLU) x 7 -> WsLinear, fully fused in VMEM."""
    x = x_ref[...]

    # PixelNorm over the feature (lane) axis.
    h = x * jax.lax.rsqrt(jnp.mean(x * x, axis=1, keepdims=True) + eps)

    # WsLinear 0 + ReLU.  Fold the scalar scale into the weight
    # (Din*Dout VPU muls) instead of scaling every activation row.
    h = jnp.dot(h, w0_ref[...] * scale0,
                preferred_element_type=jnp.float32) + b0_ref[...]
    h = jnp.maximum(h, 0.0)

    # WsLinear 1..7 — ReLU after every layer except the last (matches the
    # reference nn.Sequential: 8 WsLinear, 7 ReLU).  Static unrolled loop keeps
    # every weight VMEM-resident and fully visible to the scheduler.
    for l in range(n_rest):
        h = jnp.dot(h, wr_ref[l] * scale_rest,
                    preferred_element_type=jnp.float32) + br_ref[l]
        if l < n_rest - 1:
            h = jnp.maximum(h, 0.0)

    o_ref[...] = h


# ----------------------------- wrapper -------------------------------------

def _row_tile(n_rows):
    """Largest row tile (multiple of 8, <=512) that divides n_rows, else full."""
    for t in (512, 256, 128, 64, 32, 16, 8):
        if n_rows % t == 0:
            return t
    return n_rows


def mapping_network(params, x):
    B, z_dim = x.shape
    w0_t = params['w0_t']                      # (z_dim, w_dim)
    b0 = params['b0']                          # (w_dim,)
    wr_t = params['wr_t']                      # (n_rest, w_dim, w_dim)
    br = params['br']                          # (n_rest, w_dim)
    w_dim = w0_t.shape[1]
    n_rest = int(wr_t.shape[0])
    tb = _row_tile(B)

    kern = functools.partial(
        mapping_kernel,
        scale0=float((2.0 / z_dim) ** 0.5),
        scale_rest=float((2.0 / w_dim) ** 0.5),
        n_rest=n_rest,
        eps=1e-8,
    )
    return pl.pallas_call(
        kern,
        out_shape=jax.ShapeDtypeStruct((B, w_dim), jnp.float32),
        grid=(B // tb,),
        in_specs=[
            # activations: tiled over rows, pipelined across the grid
            pl.BlockSpec((tb, z_dim), lambda i: (i, 0)),
            # weights / biases: full blocks, constant index -> VMEM-resident
            pl.BlockSpec((z_dim, w_dim), lambda i: (0, 0)),
            pl.BlockSpec((1, w_dim), lambda i: (0, 0)),
            pl.BlockSpec((n_rest, w_dim, w_dim), lambda i: (0, 0, 0)),
            pl.BlockSpec((n_rest, 1, w_dim), lambda i: (0, 0, 0)),
        ],
        out_specs=pl.BlockSpec((tb, w_dim), lambda i: (i, 0)),
        compiler_params=pltpu.CompilerParams(
            dimension_semantics=("parallel",)),
    )(x, w0_t, b0.reshape(1, w_dim), wr_t, br.reshape(n_rest, 1, w_dim))


# ----------------------------- parameters ----------------------------------

def init_mapping_params(key, z_dim, w_dim, n_layers=8):
    # WsLinear: nn.init.normal_(weight), bias = 0.  Weights are stored
    # transposed (in_features, out_features) so the kernel computes x @ W^T.
    keys = jax.random.split(key, n_layers)
    w0_t = jax.random.normal(keys[0], (z_dim, w_dim), jnp.float32)
    wr_t = jnp.stack(
        [jax.random.normal(keys[i], (w_dim, w_dim), jnp.float32)
         for i in range(1, n_layers)], axis=0)
    return dict(w0_t=w0_t,
                b0=jnp.zeros((w_dim,), jnp.float32),
                wr_t=wr_t,
                br=jnp.zeros((n_layers - 1, w_dim), jnp.float32))


# ----------------------------- pure-JAX reference ---------------------------

def mapping_reference(params, x):
    z_dim = x.shape[1]
    w_dim = params['w0_t'].shape[1]
    h = x / jnp.sqrt(jnp.mean(x * x, axis=1, keepdims=True) + 1e-8)
    h = (h * (2.0 / z_dim) ** 0.5) @ params['w0_t'] + params['b0']
    h = jnp.maximum(h, 0.0)
    s = (2.0 / w_dim) ** 0.5
    n = params['wr_t'].shape[0]
    for l in range(n):
        h = (h * s) @ params['wr_t'][l] + params['br'][l]
        if l < n - 1:
            h = jnp.maximum(h, 0.0)
    return h


if __name__ == "__main__":
    z_dim, w_dim, B = 32, 32, 16

    key = jax.random.PRNGKey(0)
    pkey, xkey = jax.random.split(key)

    params = init_mapping_params(pkey, z_dim, w_dim)
    x = jax.random.normal(xkey, (B, z_dim), jnp.float32)

    w = mapping_network(params, x)
    w = jax.block_until_ready(w)

    assert w.shape == (B, w_dim), w.shape
    assert bool(jnp.all(jnp.isfinite(w)))

    ref = mapping_reference(params, x)
    err = float(jnp.max(jnp.abs(w - ref)))
    assert bool(jnp.allclose(w, ref, rtol=2e-2, atol=2e-2)), err

    print("KERNEL_OK")
</pallas_src>

<mosaic_0001>
module attributes {stable_mosaic.version = 11 : i64} {
  func.func @mapping_kernel(%arg0: i32, %arg1: memref<16x32xf32, #tpu.memory_space<vmem>>, %arg2: memref<32x32xf32, #tpu.memory_space<vmem>>, %arg3: memref<1x32xf32, #tpu.memory_space<vmem>>, %arg4: memref<7x32x32xf32, #tpu.memory_space<vmem>>, %arg5: memref<7x1x32xf32, #tpu.memory_space<vmem>>, %arg6: memref<16x32xf32, #tpu.memory_space<vmem>>) attributes {dimension_semantics = [#tpu.dimension_semantics<parallel>], iteration_bounds = array<i64: 1>, scalar_prefetch = 0 : i64, scratch_operands = 0 : i64, tpu.core_type = #tpu.core_type<tc>, window_params = [{transform_indices = @transform_0, window_bounds = array<i64: 16, 32>}, {pipeline_mode = #tpu.pipeline_mode<synchronous>, transform_indices = @transform_1, window_bounds = array<i64: 32, 32>}, {pipeline_mode = #tpu.pipeline_mode<synchronous>, transform_indices = @transform_2, window_bounds = array<i64: 1, 32>}, {pipeline_mode = #tpu.pipeline_mode<synchronous>, transform_indices = @transform_3, window_bounds = array<i64: 7, 32, 32>}, {pipeline_mode = #tpu.pipeline_mode<synchronous>, transform_indices = @transform_4, window_bounds = array<i64: 7, 1, 32>}, {transform_indices = @transform_5, window_bounds = array<i64: 16, 32>}]} {
    %c0 = arith.constant 0 : index
    %c0_0 = arith.constant 0 : index
    %0 = vector.load %arg1[%c0, %c0_0] : memref<16x32xf32, #tpu.memory_space<vmem>>, vector<16x32xf32>
    %1 = arith.mulf %0, %0 : vector<16x32xf32>
    %cst = arith.constant dense<0.000000e+00> : vector<16xf32>
    %2 = vector.multi_reduction <add>, %1, %cst [1] : vector<16x32xf32> to vector<16xf32>
    %3 = vector.shape_cast %2 : vector<16xf32> to vector<16x1xf32>
    %cst_1 = arith.constant 3.200000e+01 : f32
    %4 = vector.broadcast %cst_1 : f32 to vector<16x1xf32>
    %5 = arith.divf %3, %4 : vector<16x1xf32>
    %cst_2 = arith.constant 9.99999993E-9 : f32
    %6 = vector.broadcast %cst_2 : f32 to vector<16x1xf32>
    %7 = arith.addf %5, %6 : vector<16x1xf32>
    %8 = math.rsqrt %7 : vector<16x1xf32>
    %9 = vector.broadcast %8 : vector<16x1xf32> to vector<16x32xf32>
    %10 = arith.mulf %0, %9 : vector<16x32xf32>
    %c0_3 = arith.constant 0 : index
    %c0_4 = arith.constant 0 : index
    %11 = vector.load %arg2[%c0_3, %c0_4] : memref<32x32xf32, #tpu.memory_space<vmem>>, vector<32x32xf32>
    %cst_5 = arith.constant 2.500000e-01 : f32
    %12 = vector.broadcast %cst_5 : f32 to vector<32x32xf32>
    %13 = arith.mulf %11, %12 : vector<32x32xf32>
    %cst_6 = arith.constant dense<0.000000e+00> : vector<16x32xf32>
    %14 = tpu.matmul %10, %13, %cst_6 {dimension_numbers = #tpu.dot_dimension_numbers<[1], [0], [0], [1], [0, 0, 1, 1], [], []>} : vector<16x32xf32>, vector<32x32xf32>, vector<16x32xf32> -> vector<16x32xf32>
    %c0_7 = arith.constant 0 : index
    %c0_8 = arith.constant 0 : index
    %15 = vector.load %arg3[%c0_7, %c0_8] : memref<1x32xf32, #tpu.memory_space<vmem>>, vector<1x32xf32>
    %16 = vector.broadcast %15 : vector<1x32xf32> to vector<16x32xf32>
    %17 = arith.addf %14, %16 : vector<16x32xf32>
    %cst_9 = arith.constant 0.000000e+00 : f32
    %18 = vector.broadcast %cst_9 : f32 to vector<16x32xf32>
    %19 = arith.maximumf %17, %18 : vector<16x32xf32>
    %c0_10 = arith.constant 0 : index
    %c0_11 = arith.constant 0 : index
    %c0_12 = arith.constant 0 : index
    %20 = vector.load %arg4[%c0_10, %c0_11, %c0_12] : memref<7x32x32xf32, #tpu.memory_space<vmem>>, vector<1x32x32xf32>
    %21 = vector.shape_cast %20 : vector<1x32x32xf32> to vector<32x32xf32>
    %cst_13 = arith.constant 2.500000e-01 : f32
    %22 = vector.broadcast %cst_13 : f32 to vector<32x32xf32>
    %23 = arith.mulf %21, %22 : vector<32x32xf32>
    %cst_14 = arith.constant dense<0.000000e+00> : vector<16x32xf32>
    %24 = tpu.matmul %19, %23, %cst_14 {dimension_numbers = #tpu.dot_dimension_numbers<[1], [0], [0], [1], [0, 0, 1, 1], [], []>} : vector<16x32xf32>, vector<32x32xf32>, vector<16x32xf32> -> vector<16x32xf32>
    %c0_15 = arith.constant 0 : index
    %c0_16 = arith.constant 0 : index
    %c0_17 = arith.constant 0 : index
    %25 = vector.load %arg5[%c0_15, %c0_16, %c0_17] : memref<7x1x32xf32, #tpu.memory_space<vmem>>, vector<1x1x32xf32>
    %26 = vector.shape_cast %25 : vector<1x1x32xf32> to vector<1x32xf32>
    %27 = vector.broadcast %26 : vector<1x32xf32> to vector<16x32xf32>
    %28 = arith.addf %24, %27 : vector<16x32xf32>
    %cst_18 = arith.constant 0.000000e+00 : f32
    %29 = vector.broadcast %cst_18 : f32 to vector<16x32xf32>
    %30 = arith.maximumf %28, %29 : vector<16x32xf32>
    %c1 = arith.constant 1 : index
    %c0_19 = arith.constant 0 : index
    %c0_20 = arith.constant 0 : index
    %31 = vector.load %arg4[%c1, %c0_19, %c0_20] : memref<7x32x32xf32, #tpu.memory_space<vmem>>, vector<1x32x32xf32>
    %32 = vector.shape_cast %31 : vector<1x32x32xf32> to vector<32x32xf32>
    %cst_21 = arith.constant 2.500000e-01 : f32
    %33 = vector.broadcast %cst_21 : f32 to vector<32x32xf32>
    %34 = arith.mulf %32, %33 : vector<32x32xf32>
    %cst_22 = arith.constant dense<0.000000e+00> : vector<16x32xf32>
    %35 = tpu.matmul %30, %34, %cst_22 {dimension_numbers = #tpu.dot_dimension_numbers<[1], [0], [0], [1], [0, 0, 1, 1], [], []>} : vector<16x32xf32>, vector<32x32xf32>, vector<16x32xf32> -> vector<16x32xf32>
    %c1_23 = arith.constant 1 : index
    %c0_24 = arith.constant 0 : index
    %c0_25 = arith.constant 0 : index
    %36 = vector.load %arg5[%c1_23, %c0_24, %c0_25] : memref<7x1x32xf32, #tpu.memory_space<vmem>>, vector<1x1x32xf32>
    %37 = vector.shape_cast %36 : vector<1x1x32xf32> to vector<1x32xf32>
    %38 = vector.broadcast %37 : vector<1x32xf32> to vector<16x32xf32>
    %39 = arith.addf %35, %38 : vector<16x32xf32>
    %cst_26 = arith.constant 0.000000e+00 : f32
    %40 = vector.broadcast %cst_26 : f32 to vector<16x32xf32>
    %41 = arith.maximumf %39, %40 : vector<16x32xf32>
    %c2 = arith.constant 2 : index
    %c0_27 = arith.constant 0 : index
    %c0_28 = arith.constant 0 : index
    %42 = vector.load %arg4[%c2, %c0_27, %c0_28] : memref<7x32x32xf32, #tpu.memory_space<vmem>>, vector<1x32x32xf32>
    %43 = vector.shape_cast %42 : vector<1x32x32xf32> to vector<32x32xf32>
    %cst_29 = arith.constant 2.500000e-01 : f32
    %44 = vector.broadcast %cst_29 : f32 to vector<32x32xf32>
    %45 = arith.mulf %43, %44 : vector<32x32xf32>
    %cst_30 = arith.constant dense<0.000000e+00> : vector<16x32xf32>
    %46 = tpu.matmul %41, %45, %cst_30 {dimension_numbers = #tpu.dot_dimension_numbers<[1], [0], [0], [1], [0, 0, 1, 1], [], []>} : vector<16x32xf32>, vector<32x32xf32>, vector<16x32xf32> -> vector<16x32xf32>
    %c2_31 = arith.constant 2 : index
    %c0_32 = arith.constant 0 : index
    %c0_33 = arith.constant 0 : index
    %47 = vector.load %arg5[%c2_31, %c0_32, %c0_33] : memref<7x1x32xf32, #tpu.memory_space<vmem>>, vector<1x1x32xf32>
    %48 = vector.shape_cast %47 : vector<1x1x32xf32> to vector<1x32xf32>
    %49 = vector.broadcast %48 : vector<1x32xf32> to vector<16x32xf32>
    %50 = arith.addf %46, %49 : vector<16x32xf32>
    %cst_34 = arith.constant 0.000000e+00 : f32
    %51 = vector.broadcast %cst_34 : f32 to vector<16x32xf32>
    %52 = arith.maximumf %50, %51 : vector<16x32xf32>
    %c3 = arith.constant 3 : index
    %c0_35 = arith.constant 0 : index
    %c0_36 = arith.constant 0 : index
    %53 = vector.load %arg4[%c3, %c0_35, %c0_36] : memref<7x32x32xf32, #tpu.memory_space<vmem>>, vector<1x32x32xf32>
    %54 = vector.shape_cast %53 : vector<1x32x32xf32> to vector<32x32xf32>
    %cst_37 = arith.constant 2.500000e-01 : f32
    %55 = vector.broadcast %cst_37 : f32 to vector<32x32xf32>
    %56 = arith.mulf %54, %55 : vector<32x32xf32>
    %cst_38 = arith.constant dense<0.000000e+00> : vector<16x32xf32>
    %57 = tpu.matmul %52, %56, %cst_38 {dimension_numbers = #tpu.dot_dimension_numbers<[1], [0], [0], [1], [0, 0, 1, 1], [], []>} : vector<16x32xf32>, vector<32x32xf32>, vector<16x32xf32> -> vector<16x32xf32>
    %c3_39 = arith.constant 3 : index
    %c0_40 = arith.constant 0 : index
    %c0_41 = arith.constant 0 : index
    %58 = vector.load %arg5[%c3_39, %c0_40, %c0_41] : memref<7x1x32xf32, #tpu.memory_space<vmem>>, vector<1x1x32xf32>
    %59 = vector.shape_cast %58 : vector<1x1x32xf32> to vector<1x32xf32>
    %60 = vector.broadcast %59 : vector<1x32xf32> to vector<16x32xf32>
    %61 = arith.addf %57, %60 : vector<16x32xf32>
    %cst_42 = arith.constant 0.000000e+00 : f32
    %62 = vector.broadcast %cst_42 : f32 to vector<16x32xf32>
    %63 = arith.maximumf %61, %62 : vector<16x32xf32>
    %c4 = arith.constant 4 : index
    %c0_43 = arith.constant 0 : index
    %c0_44 = arith.constant 0 : index
    %64 = vector.load %arg4[%c4, %c0_43, %c0_44] : memref<7x32x32xf32, #tpu.memory_space<vmem>>, vector<1x32x32xf32>
    %65 = vector.shape_cast %64 : vector<1x32x32xf32> to vector<32x32xf32>
    %cst_45 = arith.constant 2.500000e-01 : f32
    %66 = vector.broadcast %cst_45 : f32 to vector<32x32xf32>
    %67 = arith.mulf %65, %66 : vector<32x32xf32>
    %cst_46 = arith.constant dense<0.000000e+00> : vector<16x32xf32>
    %68 = tpu.matmul %63, %67, %cst_46 {dimension_numbers = #tpu.dot_dimension_numbers<[1], [0], [0], [1], [0, 0, 1, 1], [], []>} : vector<16x32xf32>, vector<32x32xf32>, vector<16x32xf32> -> vector<16x32xf32>
    %c4_47 = arith.constant 4 : index
    %c0_48 = arith.constant 0 : index
    %c0_49 = arith.constant 0 : index
    %69 = vector.load %arg5[%c4_47, %c0_48, %c0_49] : memref<7x1x32xf32, #tpu.memory_space<vmem>>, vector<1x1x32xf32>
    %70 = vector.shape_cast %69 : vector<1x1x32xf32> to vector<1x32xf32>
    %71 = vector.broadcast %70 : vector<1x32xf32> to vector<16x32xf32>
    %72 = arith.addf %68, %71 : vector<16x32xf32>
    %cst_50 = arith.constant 0.000000e+00 : f32
    %73 = vector.broadcast %cst_50 : f32 to vector<16x32xf32>
    %74 = arith.maximumf %72, %73 : vector<16x32xf32>
    %c5 = arith.constant 5 : index
    %c0_51 = arith.constant 0 : index
    %c0_52 = arith.constant 0 : index
    %75 = vector.load %arg4[%c5, %c0_51, %c0_52] : memref<7x32x32xf32, #tpu.memory_space<vmem>>, vector<1x32x32xf32>
    %76 = vector.shape_cast %75 : vector<1x32x32xf32> to vector<32x32xf32>
    %cst_53 = arith.constant 2.500000e-01 : f32
    %77 = vector.broadcast %cst_53 : f32 to vector<32x32xf32>
    %78 = arith.mulf %76, %77 : vector<32x32xf32>
    %cst_54 = arith.constant dense<0.000000e+00> : vector<16x32xf32>
    %79 = tpu.matmul %74, %78, %cst_54 {dimension_numbers = #tpu.dot_dimension_numbers<[1], [0], [0], [1], [0, 0, 1, 1], [], []>} : vector<16x32xf32>, vector<32x32xf32>, vector<16x32xf32> -> vector<16x32xf32>
    %c5_55 = arith.constant 5 : index
    %c0_56 = arith.constant 0 : index
    %c0_57 = arith.constant 0 : index
    %80 = vector.load %arg5[%c5_55, %c0_56, %c0_57] : memref<7x1x32xf32, #tpu.memory_space<vmem>>, vector<1x1x32xf32>
    %81 = vector.shape_cast %80 : vector<1x1x32xf32> to vector<1x32xf32>
    %82 = vector.broadcast %81 : vector<1x32xf32> to vector<16x32xf32>
    %83 = arith.addf %79, %82 : vector<16x32xf32>
    %cst_58 = arith.constant 0.000000e+00 : f32
    %84 = vector.broadcast %cst_58 : f32 to vector<16x32xf32>
    %85 = arith.maximumf %83, %84 : vector<16x32xf32>
    %c6 = arith.constant 6 : index
    %c0_59 = arith.constant 0 : index
    %c0_60 = arith.constant 0 : index
    %86 = vector.load %arg4[%c6, %c0_59, %c0_60] : memref<7x32x32xf32, #tpu.memory_space<vmem>>, vector<1x32x32xf32>
    %87 = vector.shape_cast %86 : vector<1x32x32xf32> to vector<32x32xf32>
    %cst_61 = arith.constant 2.500000e-01 : f32
    %88 = vector.broadcast %cst_61 : f32 to vector<32x32xf32>
    %89 = arith.mulf %87, %88 : vector<32x32xf32>
    %cst_62 = arith.constant dense<0.000000e+00> : vector<16x32xf32>
    %90 = tpu.matmul %85, %89, %cst_62 {dimension_numbers = #tpu.dot_dimension_numbers<[1], [0], [0], [1], [0, 0, 1, 1], [], []>} : vector<16x32xf32>, vector<32x32xf32>, vector<16x32xf32> -> vector<16x32xf32>
    %c6_63 = arith.constant 6 : index
    %c0_64 = arith.constant 0 : index
    %c0_65 = arith.constant 0 : index
    %91 = vector.load %arg5[%c6_63, %c0_64, %c0_65] : memref<7x1x32xf32, #tpu.memory_space<vmem>>, vector<1x1x32xf32>
    %92 = vector.shape_cast %91 : vector<1x1x32xf32> to vector<1x32xf32>
    %93 = vector.broadcast %92 : vector<1x32xf32> to vector<16x32xf32>
    %94 = arith.addf %90, %93 : vector<16x32xf32>
    %c0_66 = arith.constant 0 : index
    %c0_67 = arith.constant 0 : index
    %95 = vector.load %arg6[%c0_66, %c0_67] : memref<16x32xf32, #tpu.memory_space<vmem>>, vector<16x32xf32>
    tpu.vector_store %arg6[%c0_66, %c0_67], %94 {strides = array<i32>} : memref<16x32xf32, #tpu.memory_space<vmem>>, vector<16x32xf32>,
    return
  }
  func.func @transform_0(%arg0: i32) -> (i32, i32) {
    %c0_i32 = arith.constant 0 : i32
    %c0_i32_0 = arith.constant 0 : i32
    return %arg0, %c0_i32 : i32, i32
  }
  func.func @transform_1(%arg0: i32) -> (i32, i32) {
    %c0_i32 = arith.constant 0 : i32
    %c0_i32_0 = arith.constant 0 : i32
    %c0_i32_1 = arith.constant 0 : i32
    return %c0_i32, %c0_i32_0 : i32, i32
  }
  func.func @transform_2(%arg0: i32) -> (i32, i32) {
    %c0_i32 = arith.constant 0 : i32
    %c0_i32_0 = arith.constant 0 : i32
    %c0_i32_1 = arith.constant 0 : i32
    return %c0_i32, %c0_i32_0 : i32, i32
  }
  func.func @transform_3(%arg0: i32) -> (i32, i32, i32) {
    %c0_i32 = arith.constant 0 : i32
    %c0_i32_0 = arith.constant 0 : i32
    %c0_i32_1 = arith.constant 0 : i32
    %c0_i32_2 = arith.constant 0 : i32
    return %c0_i32, %c0_i32_0, %c0_i32_1 : i32, i32, i32
  }
  func.func @transform_4(%arg0: i32) -> (i32, i32, i32) {
    %c0_i32 = arith.constant 0 : i32
    %c0_i32_0 = arith.constant 0 : i32
    %c0_i32_1 = arith.constant 0 : i32
    %c0_i32_2 = arith.constant 0 : i32
    return %c0_i32, %c0_i32_0, %c0_i32_1 : i32, i32, i32
  }
  func.func @transform_5(%arg0: i32) -> (i32, i32) {
    %c0_i32 = arith.constant 0 : i32
    %c0_i32_0 = arith.constant 0 : i32
    return %arg0, %c0_i32 : i32, i32
  }
}

</mosaic_0001>

<bundles_post_ra>
// kernel: tpu_custom_call.1
= control target key start
LH: loop header
LB: loop body
LE: loop exit
PB: predicated region body
PF: predicated region fallthrough
CT: control target
= control target key end

     0   :  { %10 = vsyncpa [#allocation3], 0  ;;  %s1377_s0 = inlined_call_operand.hbm [shape: f32[16,32], index: 0, kind: input, shape index: {}]   ;;  %s1378_s1 = inlined_call_operand.hbm [shape: f32[32,32], index: 1, kind: input, shape index: {}]   ;;  %s1379_s2 = inlined_call_operand.vmem [shape: f32[1,32], index: 2, kind: input, shape index: {}]   ;;  %s1380_s3 = inlined_call_operand.hbm [shape: f32[7,32,32], index: 3, kind: input, shape index: {}]   ;;  %s1381_s4 = inlined_call_operand.vmem [shape: f32[7,1,32], index: 4, kind: input, shape index: {}]   ;;  %s1382_s5 = inlined_call_operand.hbm [shape: f32[16,32], index: 5, kind: output, shape index: {}]  }
   0x1   :  { %11 = vsyncpa [#allocation6], 0 }
   0x2   :  { %12 = vsyncpa [#allocation4], 0  ;;  %s1230_s18 = smov [#allocation5]   ;;  %s1231_s20 = smov [#allocation2]  }
   0x3   :  { %s30_s19 = sshll.u32 %s1230_s18, 4  ;;  %s18_s21 = sshll.u32 %s1231_s20, 4  ;;  %s31_s19 = int_to_ptr.vmem [resolvable:$true] %s30_s19  ;;  %s1266_s21 = int_to_ptr.vmem [resolvable:$true] %s18_s21 }
   0x4   :  { %s1136_s24 = scalar_lea.hbm %s1378_s1, 512 }
   0x5   :  { %p1137_p0 = scmp.ne.s32.totalorder %s1378_s1, %s1136_s24  ;;  %p1140_p1 = scmp.lt.u32.totalorder %s1136_s24, %s1378_s1 }
   0x7   :  { %p1142_p2 = pnand %p1140_p1, %p1137_p0 }
   0x9   :  { %1145 = shalt.err (!%p1142_p2)
}
   0xa   :  { %s1146_s29 = scalar_lea.vmem %s31_s19, 512  ;;  %p1151_p4 = scmp.lt.s32.totalorder %s31_s19, %s31_s19 }
   0xb   :  { %p1147_p3 = scmp.ne.s32.totalorder %s31_s19, %s1146_s29  ;;  %p1152_p5 = scmp.lt.s32.totalorder %s1146_s29, %s1146_s29 }
   0xd   :  { %p1153_p6 = por %p1152_p5, %p1151_p4 }
   0xf   :  { %p1154_p7 = pnand %p1153_p6, %p1147_p3 }
  0x11   :  { %1157 = shalt.err (!%p1154_p7)
}
  0x12   :  { %s1232_s30 = smov 128   ;;  %s1233_s6 = smov 8  }
  0x13   :  { %36 = dma.hbm_to_vmem [thread:$0]  %s1378_s1, 512, %s31_s19, [#allocation6], %s1232_s30, %s1232_s30, %s1233_s6  }
  0x14   :  { %s1158_s11 = scalar_lea.hbm %s1377_s0, 256 }
  0x15   :  { %p1159_p8 = scmp.ne.s32.totalorder %s1377_s0, %s1158_s11  ;;  %p1162_p9 = scmp.lt.u32.totalorder %s1158_s11, %s1377_s0 }
  0x17   :  { %p1164_p10 = pnand %p1162_p9, %p1159_p8 }
  0x19   :  { %1167 = shalt.err (!%p1164_p10)
}
  0x1a   :  { %s1168_s16 = scalar_lea.vmem %s1266_s21, 256  ;;  %p1173_p12 = scmp.lt.s32.totalorder %s1266_s21, %s1266_s21 }
  0x1b   :  { %p1169_p11 = scmp.ne.s32.totalorder %s1266_s21, %s1168_s16  ;;  %p1174_p13 = scmp.lt.s32.totalorder %s1168_s16, %s1168_s16 }
  0x1d   :  { %p1175_p0 = por %p1174_p13, %p1173_p12 }
  0x1f   :  { %p1176_p1 = pnand %p1175_p0, %p1169_p11 }
  0x21   :  { %1179 = shalt.err (!%p1176_p1)
}
  0x22   :  { %24 = dma.hbm_to_vmem [thread:$0]  %s1377_s0, 256, %s1266_s21, [#allocation3], %s1232_s30, %s1232_s30, %s1233_s6  }
  0x23   :  { %s1234_s18 = smov [#allocation7]   ;;  %s1180_s23 = scalar_lea.hbm %s1380_s3, 3584 }
  0x24   :  { %s44_s19 = sshll.u32 %s1234_s18, 4  ;;  %p1181_p2 = scmp.ne.s32.totalorder %s1380_s3, %s1180_s23  ;;  %s45_s19 = int_to_ptr.vmem [resolvable:$true] %s44_s19 }
  0x25   :  { %p1184_p3 = scmp.lt.u32.totalorder %s1180_s23, %s1380_s3 }
  0x27   :  { %p1186_p4 = pnand %p1184_p3, %p1181_p2 }
  0x29   :  { %1189 = shalt.err (!%p1186_p4)
}
  0x2a   :  { %s1190_s28 = scalar_lea.vmem %s45_s19, 3584  ;;  %p1195_p6 = scmp.lt.s32.totalorder %s45_s19, %s45_s19 }
  0x2b   :  { %p1191_p5 = scmp.ne.s32.totalorder %s45_s19, %s1190_s28  ;;  %p1196_p7 = scmp.lt.s32.totalorder %s1190_s28, %s1190_s28 }
  0x2d   :  { %p1197_p8 = por %p1196_p7, %p1195_p6 }
  0x2f   :  { %p1198_p9 = pnand %p1197_p8, %p1191_p5 }
  0x31   :  { %1201 = shalt.err (!%p1198_p9)
}
  0x32   :  { %50 = dma.hbm_to_vmem [thread:$0]  %s1380_s3, 3584, %s45_s19, [#allocation6], %s1232_s30, %s1232_s30, %s1233_s6  }
  0x33   :  { %1224 = dma.done.wait [#allocation3], 256  }
  0x34   :  { %1225 = vsyncadd [#allocation3], 4294967040 }
  0x35   :  { %1226 = dma.done.wait [#allocation6], 4096  }
  0x36   :  { %1227 = vsyncadd [#allocation6], 4294963200  ;;  %v62_v0 = vld [vmem:[#allocation2] sm:$0xff]  ;;  %vm66_vm0 = vcmask 261120   ;;  %v63_v1 = vld [vmem:[#allocation2 + $0x8] sm:$0xff]  ;;  %s1235_s19 = smov [#allocation8]  }
  0x37   :  { %v64_v2 = vmul.f32 %v62_v0, %v62_v0  ;;  %v65_v3 = vmul.f32 %v63_v1, %v63_v1  ;;  %v82_v6 = vld [vmem:[#allocation5] sm:$0xff]  ;;  %v83_v7 = vld [vmem:[#allocation5 + $0x8] sm:$0xff]  ;;  %v84_v8 = vld [vmem:[#allocation5 + $0x10] sm:$0xff]  ;;  %s883_s20 = sshll.u32 %s1235_s19, 4  ;;  %s884_s20 = int_to_ptr.vmem [resolvable:$true] %s883_s20 }
  0x38   :  { %v86_v9 = vmul.f32 0.25, %v82_v6  ;;  %v87_v10 = vmul.f32 0.25, %v83_v7  ;;  %v85_v11 = vld [vmem:[#allocation5 + $0x18] sm:$0xff]  ;;  %v88_v12 = vmul.f32 0.25, %v84_v8  ;;  %v180_v16 = vld [vmem:[#allocation7] sm:$0xff]  ;;  %v181_v17 = vld [vmem:[#allocation7 + $0x8] sm:$0xff]  ;;  %p1207_p11 = scmp.lt.s32.totalorder %s884_s20, %s884_s20 }
  0x39   :  { %v67_v4 = vsel %vm66_vm0, %v64_v2, 0.0  ;;  %v70_v5 = vsel %vm66_vm0, %v65_v3, 0.0  ;;  %v89_v13 = vmul.f32 0.25, %v85_v11  ;;  %v184_v18 = vmul.f32 0.25, %v180_v16  ;;  %v182_v31 = vld [vmem:[#allocation7 + $0x10] sm:$0xff]  ;;  %v183_v32 = vld [vmem:[#allocation7 + $0x18] sm:$0xff] }
  0x3a   :  { %68 = vadd.xlane.f32.xlu0 %v67_v4  ;;  %v1062_v14 = vpack.c.bf16 %v87_v10, %v86_v9  ;;  %v185_v19 = vmul.f32 0.25, %v181_v17  ;;  %v186_v33 = vmul.f32 0.25, %v182_v31  ;;  %v187_v34 = vmul.f32 0.25, %v183_v32  ;;  %v279_v36 = vld [vmem:[#allocation7 + $0x20] sm:$0xff]  ;;  %v280_v37 = vld [vmem:[#allocation7 + $0x28] sm:$0xff]  ;;  %v281_v48 = vld [vmem:[#allocation7 + $0x30] sm:$0xff] }
  0x3b   :  { %v1066_v15 = vpack.c.bf16 %v89_v13, %v88_v12  ;;  %v283_v38 = vmul.f32 0.25, %v279_v36  ;;  %v284_v39 = vmul.f32 0.25, %v280_v37  ;;  %v896_v41 = vld [vmem:[%s1379_s2] ss:$0 sm:$0xff]  ;;  %v282_v49 = vld [vmem:[#allocation7 + $0x38] sm:$0xff]  ;;  %v285_v50 = vmul.f32 0.25, %v281_v48 }
  0x3c   :  { %1063 = vmatprep.subr.bf16.mxu0 %v1062_v14  ;;  %v1070_v20 = vpack.c.bf16 %v185_v19, %v184_v18  ;;  %v1074_v35 = vpack.c.bf16 %v187_v34, %v186_v33  ;;  %v286_v51 = vmul.f32 0.25, %v282_v49  ;;  %v379_v53 = vld [vmem:[#allocation7 + $0x40] sm:$0xff]  ;;  %v380_v54 = vld [vmem:[#allocation7 + $0x48] sm:$0xff]  ;;  %v899_v58 = vld [vmem:[%s1381_s4] ss:$0 sm:$0xff]  ;;  %s1202_s22 = scalar_lea.vmem %s884_s20, 256 }
  0x3d   :  { %1065 = vmatpush3.bf16.msra.mxu0 %v1062_v14  ;;  %v1078_v40 = vpack.c.bf16 %v284_v39, %v283_v38  ;;  %v383_v55 = vmul.f32 0.25, %v379_v53  ;;  %v384_v56 = vmul.f32 0.25, %v380_v54  ;;  %v382_v2 = vld [vmem:[#allocation7 + $0x58] sm:$0xff]  ;;  %v479_v6 = vld [vmem:[#allocation7 + $0x60] sm:$0xff]  ;;  %v480_v7 = vld [vmem:[#allocation7 + $0x68] sm:$0xff]  ;;  %p1203_p10 = scmp.ne.s32.totalorder %s884_s20, %s1202_s22  ;;  %p1208_p12 = scmp.lt.s32.totalorder %s1202_s22, %s1202_s22 }
  0x3e   :  { %71 = vadd.xlane.f32.xlu0 %v70_v5  ;;  %1067 = vmatprep.subr.bf16.mxu0 %v1066_v15  ;;  %v1082_v52 = vpack.c.bf16 %v286_v51, %v285_v50  ;;  %v386_v4 = vmul.f32 0.25, %v382_v2  ;;  %v483_v8 = vmul.f32 0.25, %v479_v6  ;;  %v484_v9 = vmul.f32 0.25, %v480_v7  ;;  %v903_v11 = vld [vmem:[%s1381_s4 + $0x1] ss:$0 sm:$0xff]  ;;  %v482_v19 = vld [vmem:[#allocation7 + $0x78] sm:$0xff] }
  0x3f   :  { %1071 = vmatprep.subr.bf16.mxu1 %v1070_v20  ;;  %v1086_v57 = vpack.c.bf16 %v384_v56, %v383_v55  ;;  %v481_v18 = vld [vmem:[#allocation7 + $0x70] sm:$0xff]  ;;  %v582_v36 = vld [vmem:[#allocation7 + $0x98] sm:$0xff]  ;;  %p1209_p13 = por %p1208_p12, %p1207_p11 }
  0x40   :  { %1073 = vmatpush3.bf16.msra.mxu1 %v1070_v20  ;;  %v1094_v10 = vpack.c.bf16 %v484_v9, %v483_v8  ;;  %v485_v20 = vmul.f32 0.25, %v481_v18  ;;  %v586_v38 = vmul.f32 0.25, %v582_v36  ;;  %v682_v53 = vld [vmem:[#allocation7 + $0xb8] sm:$0xff] }
  0x41   :  { %1069 = vmatpush3.bf16.msra.mxu0 %v1066_v15  ;;  %1075 = vmatprep.subr.bf16.mxu1 %v1074_v35  ;;  %v686_v55 = vmul.f32 0.25, %v682_v53  ;;  %v782_v6 = vld [vmem:[#allocation7 + $0xd8] sm:$0xff]  ;;  %p1210_p0 = pnand %p1209_p13, %p1203_p10 }
  0x42   :  { %1079 = vmatprep.subr.bf16.mxu0 %v1078_v40  ;;  %v786_v8 = vmul.f32 0.25, %v782_v6 }
  0x44   :  { %1077 = vmatpush3.bf16.msra.mxu1 %v1074_v35  ;;  %v581_v35 = vld [vmem:[#allocation7 + $0x90] sm:$0xff] }
  0x45   :  { %1087 = vmatprep.subr.bf16.mxu1 %v1086_v57  ;;  %v585_v37 = vmul.f32 0.25, %v581_v35 }
  0x47   :  { %v1106_v39 = vpack.c.bf16 %v586_v38, %v585_v37 }
  0xc7   :  { %v69_v21 = vpop.xlane.xlu0 %68 }
  0xc8   :  { %v74_v22 = vmul.f32 0.03125, %v69_v21  ;;  %v486_v21 = vmul.f32 0.25, %v482_v19 }
  0xca   :  { %v76_v23 = vadd.f32 1e-08, %v74_v22  ;;  %v1098_v22 = vpack.c.bf16 %v486_v21, %v485_v20 }
  0xcb   :  { %v72_v24 = vpop.xlane.xlu0 %71 }
  0xcc   :  { %1132 = vrsqrt.f32 %v76_v23  ;;  %v75_v25 = vmul.f32 0.03125, %v72_v24  ;;  %v579_v23 = vld [vmem:[#allocation7 + $0x80] sm:$0xff]  ;;  %v580_v24 = vld [vmem:[#allocation7 + $0x88] sm:$0xff] }
  0xce   :  { %v77_v26 = vadd.f32 1e-08, %v75_v25  ;;  %v583_v25 = vmul.f32 0.25, %v579_v23 }
  0xd0   :  { %1134 = vrsqrt.f32 %v77_v26  ;;  %v584_v26 = vmul.f32 0.25, %v580_v24 }
  0xd6   :  { %v1133_v27 = vpop.eup %1132 }
  0xd7   :  { %v80_v28 = vmul.f32 %v1133_v27, %v62_v0  ;;  %v1102_v27 = vpack.c.bf16 %v584_v26, %v583_v25 }
  0xd9   :  { %982 = vmatprep.mubr.msk.f32.mxu0 %vm66_vm0, %v80_v28  ;;  %v907_v28 = vld [vmem:[%s1381_s4 + $0x2] ss:$0 sm:$0xff] }
  0xda   :  { %v1135_v29 = vpop.eup %1134 }
  0xdb   :  { %v81_v30 = vmul.f32 %v1135_v29, %v63_v1  ;;  %v381_v1 = vld [vmem:[#allocation7 + $0x50] sm:$0xff] }
  0xdc   :  { %v385_v3 = vmul.f32 0.25, %v381_v1 }
  0xdd   :  { %983 = vmatmul.mubr.msk.f32.vlgmr.msra.gmra.mrb[0].mxu0 %vm66_vm0, %v81_v30 }
  0xde   :  { %1081 = vmatpush3.bf16.msra.mxu0 %v1078_v40  ;;  %v1090_v5 = vpack.c.bf16 %v386_v4, %v385_v3  ;;  %v679_v40 = vld [vmem:[#allocation7 + $0xa0] sm:$0xff] }
  0xdf   :  { %1083 = vmatprep.subr.bf16.mxu0 %v1082_v52 }
  0xe2   :  { %1085 = vmatpush3.bf16.msra.mxu0 %v1082_v52  ;;  %v681_v52 = vld [vmem:[#allocation7 + $0xb0] sm:$0xff] }
  0xe3   :  { %1095 = vmatprep.subr.bf16.mxu0 %v1094_v10  ;;  %v685_v54 = vmul.f32 0.25, %v681_v52 }
  0xe5   :  { %v1114_v56 = vpack.c.bf16 %v686_v55, %v685_v54 }
 0x1b0   :  { %v984_v42 = vpop.f32.mrb[0].mxu0 }
 0x1b1   :  { %v175_v43 = vadd.f32 %v984_v42, %v896_v41  ;;  %v169_v44 = vpop.f32.mrb[1].mxu0  ;;  %v683_v42 = vmul.f32 0.25, %v679_v40 }
 0x1b2   :  { %v170_v45 = vadd.f32 %v896_v41, %v169_v44  ;;  %v680_v41 = vld [vmem:[#allocation7 + $0xa8] sm:$0xff] }
 0x1b3   :  { %v179_v47 = vmax.f32 %v175_v43, 0.0  ;;  %v684_v43 = vmul.f32 0.25, %v680_v41 }
 0x1b4   :  { %v178_v46 = vmax.f32 %v170_v45, 0.0  ;;  %v911_v45 = vld [vmem:[%s1381_s4 + $0x3] ss:$0 sm:$0xff] }
 0x1b5   :  { %v1110_v44 = vpack.c.bf16 %v684_v43, %v683_v42 }
 0x1b6   :  { %993 = vmatprep.mubr.msk.f32.mxu1 %vm66_vm0, %v178_v46 }
 0x1b7   :  { %994 = vmatmul.mubr.msk.f32.vlgmr.msra.gmra.mrb[0].mxu1 %vm66_vm0, %v179_v47 }
 0x1b8   :  { %1089 = vmatpush3.bf16.msra.mxu1 %v1086_v57  ;;  %v779_v57 = vld [vmem:[#allocation7 + $0xc0] sm:$0xff] }
 0x1b9   :  { %1091 = vmatprep.subr.bf16.mxu1 %v1090_v5 }
 0x1bc   :  { %1093 = vmatpush3.bf16.msra.mxu1 %v1090_v5  ;;  %v781_v5 = vld [vmem:[#allocation7 + $0xd0] sm:$0xff] }
 0x1bd   :  { %1103 = vmatprep.subr.bf16.mxu1 %v1102_v27  ;;  %v785_v7 = vmul.f32 0.25, %v781_v5 }
 0x1bf   :  { %v1122_v9 = vpack.c.bf16 %v786_v8, %v785_v7 }
 0x28a   :  { %v995_v59 = vpop.f32.mrb[0].mxu1 }
 0x28b   :  { %v273_v60 = vadd.f32 %v995_v59, %v899_v58  ;;  %v267_v61 = vpop.f32.mrb[1].mxu1  ;;  %v783_v59 = vmul.f32 0.25, %v779_v57 }
 0x28c   :  { %v268_v62 = vadd.f32 %v899_v58, %v267_v61  ;;  %v780_v58 = vld [vmem:[#allocation7 + $0xc8] sm:$0xff] }
 0x28d   :  { %v277_v0 = vmax.f32 %v273_v60, 0.0  ;;  %v784_v60 = vmul.f32 0.25, %v780_v58 }
 0x28e   :  { %v276_v63 = vmax.f32 %v268_v62, 0.0  ;;  %v915_v62 = vld [vmem:[%s1381_s4 + $0x4] ss:$0 sm:$0xff] }
 0x28f   :  { %v1118_v61 = vpack.c.bf16 %v784_v60, %v783_v59 }
 0x290   :  { %1004 = vmatprep.mubr.msk.f32.mxu0 %vm66_vm0, %v276_v63 }
 0x291   :  { %1005 = vmatmul.mubr.msk.f32.vlgmr.msra.gmra.mrb[2].mxu0 %vm66_vm0, %v277_v0 }
 0x292   :  { %1097 = vmatpush3.bf16.msra.mxu0 %v1094_v10  ;;  %v919_v10 = vld [vmem:[%s1381_s4 + $0x5] ss:$0 sm:$0xff] }
 0x293   :  { %1099 = vmatprep.subr.bf16.mxu0 %v1098_v22 }
 0x296   :  { %1101 = vmatpush3.bf16.msra.mxu0 %v1098_v22 }
 0x297   :  { %1111 = vmatprep.subr.bf16.mxu0 %v1110_v44 }
 0x364   :  { %v1006_v12 = vpop.f32.mrb[2].mxu0 }
 0x365   :  { %v373_v13 = vadd.f32 %v1006_v12, %v903_v11  ;;  %v367_v14 = vpop.f32.mrb[3].mxu0 }
 0x366   :  { %v368_v15 = vadd.f32 %v903_v11, %v367_v14 }
 0x367   :  { %v377_v17 = vmax.f32 %v373_v13, 0.0 }
 0x368   :  { %v376_v16 = vmax.f32 %v368_v15, 0.0 }
 0x36a   :  { %1015 = vmatprep.mubr.msk.f32.mxu1 %vm66_vm0, %v376_v16 }
 0x36b   :  { %1016 = vmatmul.mubr.msk.f32.vlgmr.msra.gmra.mrb[2].mxu1 %vm66_vm0, %v377_v17  ;;  %v923_v17 = vld [vmem:[%s1381_s4 + $0x6] ss:$0 sm:$0xff] }
 0x36c   :  { %1105 = vmatpush3.bf16.msra.mxu1 %v1102_v27 }
 0x36d   :  { %1107 = vmatprep.subr.bf16.mxu1 %v1106_v39 }
 0x370   :  { %1109 = vmatpush3.bf16.msra.mxu1 %v1106_v39 }
 0x371   :  { %1119 = vmatprep.subr.bf16.mxu1 %v1118_v61 }
 0x43e   :  { %v1017_v29 = vpop.f32.mrb[2].mxu1 }
 0x43f   :  { %v473_v30 = vadd.f32 %v1017_v29, %v907_v28  ;;  %v467_v31 = vpop.f32.mrb[3].mxu1 }
 0x440   :  { %v468_v32 = vadd.f32 %v907_v28, %v467_v31 }
 0x441   :  { %v477_v34 = vmax.f32 %v473_v30, 0.0 }
 0x442   :  { %v476_v33 = vmax.f32 %v468_v32, 0.0 }
 0x444   :  { %1026 = vmatprep.mubr.msk.f32.mxu0 %vm66_vm0, %v476_v33 }
 0x445   :  { %1027 = vmatmul.mubr.msk.f32.vlgmr.msra.gmra.mrb[4].mxu0 %vm66_vm0, %v477_v34 }
 0x446   :  { %1113 = vmatpush3.bf16.msra.mxu0 %v1110_v44 }
 0x447   :  { %1115 = vmatprep.subr.bf16.mxu0 %v1114_v56 }
 0x44a   :  { %1117 = vmatpush3.bf16.msra.mxu0 %v1114_v56 }
 0x518   :  { %v1028_v46 = vpop.f32.mrb[4].mxu0 }
 0x519   :  { %v573_v47 = vadd.f32 %v1028_v46, %v911_v45  ;;  %v567_v48 = vpop.f32.mrb[5].mxu0 }
 0x51a   :  { %v568_v49 = vadd.f32 %v911_v45, %v567_v48 }
 0x51b   :  { %v577_v51 = vmax.f32 %v573_v47, 0.0 }
 0x51c   :  { %v576_v50 = vmax.f32 %v568_v49, 0.0 }
 0x51e   :  { %1037 = vmatprep.mubr.msk.f32.mxu1 %vm66_vm0, %v576_v50 }
 0x51f   :  { %1038 = vmatmul.mubr.msk.f32.vlgmr.msra.gmra.mrb[4].mxu1 %vm66_vm0, %v577_v51 }
 0x520   :  { %1121 = vmatpush3.bf16.msra.mxu1 %v1118_v61 }
 0x521   :  { %1123 = vmatprep.subr.bf16.mxu1 %v1122_v9 }
 0x524   :  { %1125 = vmatpush3.bf16.msra.mxu1 %v1122_v9 }
 0x5f2   :  { %v1039_v63 = vpop.f32.mrb[4].mxu1 }
 0x5f3   :  { %v673_v0 = vadd.f32 %v1039_v63, %v915_v62  ;;  %v667_v1 = vpop.f32.mrb[5].mxu1 }
 0x5f4   :  { %v668_v2 = vadd.f32 %v915_v62, %v667_v1 }
 0x5f5   :  { %v677_v4 = vmax.f32 %v673_v0, 0.0 }
 0x5f6   :  { %v676_v3 = vmax.f32 %v668_v2, 0.0 }
 0x5f8   :  { %1048 = vmatprep.mubr.msk.f32.mxu0 %vm66_vm0, %v676_v3 }
 0x5f9   :  { %1049 = vmatmul.mubr.msk.f32.vlgmr.msra.gmra.mrb[6].mxu0 %vm66_vm0, %v677_v4 }
 0x6cc   :  { %v1050_v11 = vpop.f32.mrb[6].mxu0 }
 0x6cd   :  { %v773_v12 = vadd.f32 %v1050_v11, %v919_v10  ;;  %v767_v13 = vpop.f32.mrb[7].mxu0 }
 0x6ce   :  { %v768_v14 = vadd.f32 %v919_v10, %v767_v13 }
 0x6cf   :  { %v777_v16 = vmax.f32 %v773_v12, 0.0 }
 0x6d0   :  { %v776_v15 = vmax.f32 %v768_v14, 0.0 }
 0x6d2   :  { %1059 = vmatprep.mubr.msk.f32.mxu1 %vm66_vm0, %v776_v15 }
 0x6d3   :  { %1060 = vmatmul.mubr.msk.f32.vlgmr.msra.gmra.mrb[6].mxu1 %vm66_vm0, %v777_v16 }
 0x7a6   :  { %v1061_v18 = vpop.f32.mrb[6].mxu1 }
 0x7a7   :  { %v873_v19 = vadd.f32 %v1061_v18, %v923_v17  ;;  %v867_v20 = vpop.f32.mrb[7].mxu1 }
 0x7a8   :  { %v868_v21 = vadd.f32 %v923_v17, %v867_v20 }
 0x7a9   :  { %877 = vst.msk [vmem:[#allocation8 + $0x8] sm:$0xff] %vm66_vm0, %v873_v19 }
 0x7aa   :  { %876 = vst.msk [vmem:[#allocation8] sm:$0xff] %vm66_vm0, %v868_v21 }
 0x7ab   :  { %1213 = shalt.err (!%p1210_p0)
}
 0x7ac   :  { %s1214_s24 = scalar_lea.hbm %s1382_s5, 256 }
 0x7ad   :  { %p1215_p1 = scmp.ne.s32.totalorder %s1382_s5, %s1214_s24  ;;  %p1218_p2 = scmp.lt.u32.totalorder %s1214_s24, %s1382_s5 }
 0x7af   :  { %p1220_p3 = pnand %p1218_p2, %p1215_p1 }
 0x7b1   :  { %1223 = shalt.err (!%p1220_p3)
}
 0x7b2   :  { %889 = dma.vmem_to_hbm [thread:$0]  %s884_s20, 256, %s1382_s5, [#allocation4], %s1232_s30, %s1232_s30, %s1233_s6  }
 0x7b3   :  { %1228 = dma.done.wait [#allocation4], 256  }
 0x7b4   :  { %1229 = vsyncadd [#allocation4], 4294967040 }
 0x7b5   :  { %893 = vsyncpa [#allocation3], 1 }
 0x7b6   :  { %894 = vsyncpa [#allocation6], 1 }
 0x7b7   :  { %895 = vsyncpa [#allocation4], 1 }

</bundles_post_ra>
